<compile_context>
chip_gen: v6e
topology: v6e:2x2x1
jax: 0.10.0
libtpu: 0.0.40
codegen_flags: <defaults>
</compile_context>

<pallas_src>
import functools

import jax
import jax.numpy as jnp
from jax import lax
from jax.experimental import pallas as pl
from jax.experimental.pallas import tpu as pltpu

_MASK_BIAS = -1e30  # large finite negative instead of -inf (no NaN for fully-masked rows)


def _nli_kernel(x_ref, wqkv_ref, bqkv_ref, mbias_ref, out_ref, attn_ref, *,
                nh, d, inv_tp):
    n_f = nh * d
    x = x_ref[...]

    # Single fused Q/K/V projection: one MXU matmul with N = 3*n_f, one bias broadcast.
    qkv = jnp.dot(x, wqkv_ref[...], preferred_element_type=jnp.float32) + bqkv_ref[...]
    q = qkv[:, :n_f] * inv_tp          # fold the 1/tp temperature into q
    k = qkv[:, n_f:2 * n_f]
    v = qkv[:, 2 * n_f:]

    mbias = mbias_ref[...]             # additive mask bias: 0.0 or -1e30

    out_cols = []
    inv_nh = 1.0 / nh
    for h in range(nh):                # static loop over heads (nh is small)
        qh = q[:, h * d:(h + 1) * d]
        kh = k[:, h * d:(h + 1) * d]
        vh = v[:, h * d:(h + 1) * d]
        # q @ k^T with the contraction on k's last dim -> no explicit transpose pass.
        s = lax.dot_general(qh, kh, (((1,), (1,)), ((), ())),
                            preferred_element_type=jnp.float32)
        s = s + mbias
        m = jnp.max(s, axis=-1, keepdims=True)
        e = jnp.exp(s - m)
        denom = jnp.sum(e, axis=-1, keepdims=True)
        # EUP approximate reciprocal + one Newton refinement on the (n_a, 1) vector;
        # the normalization becomes a broadcast multiply instead of an (n_a, n_a) divide.
        inv = pl.reciprocal(denom, approx=True)
        inv = inv * (2.0 - denom * inv)
        alpha = e * inv
        out_cols.append(jnp.dot(alpha, vh, preferred_element_type=jnp.float32))
        # Accumulate the head-mean attention directly into the output ref.
        if h == 0:
            attn_ref[...] = alpha * inv_nh
        else:
            attn_ref[...] += alpha * inv_nh

    # One lane-dense full-tile store of all heads (instead of nh narrow column stores).
    out_ref[...] = jnp.concatenate(out_cols, axis=-1)


def non_local_interaction(x, batch_mask, wq, bq, wk, bk, wv, bv,
                          num_head=4, temperature_coeff=2.0):
    """x: (1, n_a, n_f) f32, batch_mask: (n_a, n_a) bool (True == masked out).
    Returns (out (1, n_a, n_f), attn_mean (1, n_a, n_a))."""
    _, n_a, n_f = x.shape
    assert num_head > 0 and n_f % num_head == 0
    d = n_f // num_head
    inv_tp = float(1.0 / (temperature_coeff * d) ** 0.5)

    x2 = x[0].astype(jnp.float32)
    # nn.Linear computes y = x @ W.T + b; pre-transpose and fuse the three projections
    # into a single (n_f, 3*n_f) weight and a single (1, 3*n_f) bias.
    w_qkv = jnp.concatenate([wq.T, wk.T, wv.T], axis=1).astype(jnp.float32)
    b_qkv = jnp.concatenate([bq, bk, bv])[None, :].astype(jnp.float32)
    # Additive mask bias precomputed once in the wrapper.
    mbias = jnp.where(batch_mask, jnp.float32(_MASK_BIAS), jnp.float32(0.0))

    kern = functools.partial(_nli_kernel, nh=num_head, d=d, inv_tp=inv_tp)

    def full(shape):
        return pl.BlockSpec(shape, lambda *_: (0,) * len(shape))

    out, attn = pl.pallas_call(
        kern,
        out_shape=(jax.ShapeDtypeStruct((n_a, n_f), jnp.float32),
                   jax.ShapeDtypeStruct((n_a, n_a), jnp.float32)),
        grid=(1,),
        in_specs=[full((n_a, n_f)),
                  full((n_f, 3 * n_f)),
                  full((1, 3 * n_f)),
                  full((n_a, n_a))],
        out_specs=(full((n_a, n_f)), full((n_a, n_a))),
        compiler_params=pltpu.CompilerParams(
            dimension_semantics=("arbitrary",)),
    )(x2, w_qkv, b_qkv, mbias)
    return out[None], attn[None]


def _reference(x, batch_mask, wq, bq, wk, bk, wv, bv, num_head, temperature_coeff):
    """Plain-JAX re-implementation of the PyTorch forward (for verification)."""
    _, n_a, n_f = x.shape
    d = n_f // num_head
    tp = (temperature_coeff * d) ** 0.5
    q = (x @ wq.T + bq).reshape(1, n_a, num_head, d).transpose(2, 0, 1, 3)
    k_t = (x @ wk.T + bk).reshape(1, n_a, num_head, d).transpose(2, 0, 3, 1)
    v = (x @ wv.T + bv).reshape(1, n_a, num_head, d).transpose(2, 0, 1, 3)
    a = q @ k_t / tp
    a = jnp.where(batch_mask[None, None], -jnp.inf, a)
    alpha = jax.nn.softmax(a, axis=-1)
    out = (alpha @ v).transpose(1, 2, 0, 3).reshape(1, n_a, n_f)
    return out, alpha.mean(axis=0)


if __name__ == "__main__":
    n_a, n_f, num_head = 16, 32, 4
    temperature_coeff = 2.0

    key = jax.random.PRNGKey(0)
    kx, kwq, kbq, kwk, kbk, kwv, kbv = jax.random.split(key, 7)

    x = jax.random.normal(kx, (1, n_a, n_f), dtype=jnp.float32)
    # Block-diagonal batch mask: two "molecules" of 8 atoms; True == masked out.
    ids = jnp.arange(n_a) // 8
    batch_mask = ids[:, None] != ids[None, :]

    scale = 1.0 / jnp.sqrt(jnp.float32(n_f))
    wq = jax.random.normal(kwq, (n_f, n_f), jnp.float32) * scale
    bq = jax.random.normal(kbq, (n_f,), jnp.float32) * 0.1
    wk = jax.random.normal(kwk, (n_f, n_f), jnp.float32) * scale
    bk = jax.random.normal(kbk, (n_f,), jnp.float32) * 0.1
    wv = jax.random.normal(kwv, (n_f, n_f), jnp.float32) * scale
    bv = jax.random.normal(kbv, (n_f,), jnp.float32) * 0.1

    out, attn = non_local_interaction(
        x, batch_mask, wq, bq, wk, bk, wv, bv,
        num_head=num_head, temperature_coeff=temperature_coeff)
    out = jax.block_until_ready(out)
    attn = jax.block_until_ready(attn)

    ref_out, ref_attn = _reference(
        x, batch_mask, wq, bq, wk, bk, wv, bv, num_head, temperature_coeff)

    assert out.shape == (1, n_a, n_f) and attn.shape == (1, n_a, n_a)
    # Tolerance relaxed slightly vs 1e-5: the softmax denominator uses the EUP
    # approximate reciprocal (refined by one Newton step).
    assert jnp.allclose(out, ref_out, atol=1e-3, rtol=1e-3)
    assert jnp.allclose(attn, ref_attn, atol=1e-3, rtol=1e-3)
    print("KERNEL_OK")
</pallas_src>

<mosaic_0001>
module attributes {stable_mosaic.version = 11 : i64} {
  func.func @_nli_kernel(%arg0: i32, %arg1: memref<16x32xf32, #tpu.memory_space<vmem>>, %arg2: memref<32x96xf32, #tpu.memory_space<vmem>>, %arg3: memref<1x96xf32, #tpu.memory_space<vmem>>, %arg4: memref<16x16xf32, #tpu.memory_space<vmem>>, %arg5: memref<16x32xf32, #tpu.memory_space<vmem>>, %arg6: memref<16x16xf32, #tpu.memory_space<vmem>>) attributes {dimension_semantics = [#tpu.dimension_semantics<arbitrary>], iteration_bounds = array<i64: 1>, scalar_prefetch = 0 : i64, scratch_operands = 0 : i64, tpu.core_type = #tpu.core_type<tc>, window_params = [{pipeline_mode = #tpu.pipeline_mode<synchronous>, transform_indices = @transform_0, window_bounds = array<i64: 16, 32>}, {pipeline_mode = #tpu.pipeline_mode<synchronous>, transform_indices = @transform_1, window_bounds = array<i64: 32, 96>}, {pipeline_mode = #tpu.pipeline_mode<synchronous>, transform_indices = @transform_2, window_bounds = array<i64: 1, 96>}, {pipeline_mode = #tpu.pipeline_mode<synchronous>, transform_indices = @transform_3, window_bounds = array<i64: 16, 16>}, {pipeline_mode = #tpu.pipeline_mode<synchronous>, transform_indices = @transform_4, window_bounds = array<i64: 16, 32>}, {pipeline_mode = #tpu.pipeline_mode<synchronous>, transform_indices = @transform_5, window_bounds = array<i64: 16, 16>}]} {
    %c0 = arith.constant 0 : index
    %c0_0 = arith.constant 0 : index
    %0 = vector.load %arg1[%c0, %c0_0] : memref<16x32xf32, #tpu.memory_space<vmem>>, vector<16x32xf32>
    %c0_1 = arith.constant 0 : index
    %c0_2 = arith.constant 0 : index
    %1 = vector.load %arg2[%c0_1, %c0_2] : memref<32x96xf32, #tpu.memory_space<vmem>>, vector<32x96xf32>
    %cst = arith.constant dense<0.000000e+00> : vector<16x96xf32>
    %2 = tpu.matmul %0, %1, %cst {dimension_numbers = #tpu.dot_dimension_numbers<[1], [0], [0], [1], [0, 0, 1, 1], [], []>} : vector<16x32xf32>, vector<32x96xf32>, vector<16x96xf32> -> vector<16x96xf32>
    %c0_3 = arith.constant 0 : index
    %c0_4 = arith.constant 0 : index
    %3 = vector.load %arg3[%c0_3, %c0_4] : memref<1x96xf32, #tpu.memory_space<vmem>>, vector<1x96xf32>
    %4 = vector.broadcast %3 : vector<1x96xf32> to vector<16x96xf32>
    %5 = arith.addf %2, %4 : vector<16x96xf32>
    %6 = vector.extract_strided_slice %5 {offsets = [0, 0], sizes = [16, 32], strides = [1, 1]} : vector<16x96xf32> to vector<16x32xf32>
    %cst_5 = arith.constant 2.500000e-01 : f32
    %7 = vector.broadcast %cst_5 : f32 to vector<16x32xf32>
    %8 = arith.mulf %6, %7 : vector<16x32xf32>
    %9 = vector.extract_strided_slice %5 {offsets = [0, 32], sizes = [16, 32], strides = [1, 1]} : vector<16x96xf32> to vector<16x32xf32>
    %10 = vector.extract_strided_slice %5 {offsets = [0, 64], sizes = [16, 32], strides = [1, 1]} : vector<16x96xf32> to vector<16x32xf32>
    %c0_6 = arith.constant 0 : index
    %c0_7 = arith.constant 0 : index
    %11 = vector.load %arg4[%c0_6, %c0_7] : memref<16x16xf32, #tpu.memory_space<vmem>>, vector<16x16xf32>
    %12 = vector.extract_strided_slice %8 {offsets = [0, 0], sizes = [16, 8], strides = [1, 1]} : vector<16x32xf32> to vector<16x8xf32>
    %13 = vector.extract_strided_slice %9 {offsets = [0, 0], sizes = [16, 8], strides = [1, 1]} : vector<16x32xf32> to vector<16x8xf32>
    %14 = vector.extract_strided_slice %10 {offsets = [0, 0], sizes = [16, 8], strides = [1, 1]} : vector<16x32xf32> to vector<16x8xf32>
    %cst_8 = arith.constant dense<0.000000e+00> : vector<16x16xf32>
    %15 = tpu.matmul %12, %13, %cst_8 {dimension_numbers = #tpu.dot_dimension_numbers<[1], [1], [0], [0], [0, 0, 1, 0], [], []>} : vector<16x8xf32>, vector<16x8xf32>, vector<16x16xf32> -> vector<16x16xf32>
    %16 = arith.addf %15, %11 : vector<16x16xf32>
    %cst_9 = arith.constant dense<0xFF800000> : vector<16xf32>
    %17 = vector.multi_reduction <maximumf>, %16, %cst_9 [1] : vector<16x16xf32> to vector<16xf32>
    %18 = vector.shape_cast %17 : vector<16xf32> to vector<16x1xf32>
    %19 = vector.broadcast %18 : vector<16x1xf32> to vector<16x16xf32>
    %20 = arith.subf %16, %19 : vector<16x16xf32>
    %21 = math.exp %20 : vector<16x16xf32>
    %cst_10 = arith.constant dense<0.000000e+00> : vector<16xf32>
    %22 = vector.multi_reduction <add>, %21, %cst_10 [1] : vector<16x16xf32> to vector<16xf32>
    %23 = vector.shape_cast %22 : vector<16xf32> to vector<16x1xf32>
    %24 = tpu.reciprocal %23 {approx = true} : vector<16x1xf32> -> vector<16x1xf32>
    %25 = arith.mulf %23, %24 : vector<16x1xf32>
    %cst_11 = arith.constant 2.000000e+00 : f32
    %26 = vector.broadcast %cst_11 : f32 to vector<16x1xf32>
    %27 = arith.subf %26, %25 : vector<16x1xf32>
    %28 = arith.mulf %24, %27 : vector<16x1xf32>
    %29 = vector.broadcast %28 : vector<16x1xf32> to vector<16x16xf32>
    %30 = arith.mulf %21, %29 : vector<16x16xf32>
    %cst_12 = arith.constant dense<0.000000e+00> : vector<16x8xf32>
    %31 = tpu.matmul %30, %14, %cst_12 {dimension_numbers = #tpu.dot_dimension_numbers<[1], [0], [0], [1], [0, 0, 1, 1], [], []>} : vector<16x16xf32>, vector<16x8xf32>, vector<16x8xf32> -> vector<16x8xf32>
    %cst_13 = arith.constant 2.500000e-01 : f32
    %32 = vector.broadcast %cst_13 : f32 to vector<16x16xf32>
    %33 = arith.mulf %30, %32 : vector<16x16xf32>
    %c0_14 = arith.constant 0 : index
    %c0_15 = arith.constant 0 : index
    %34 = vector.load %arg6[%c0_14, %c0_15] : memref<16x16xf32, #tpu.memory_space<vmem>>, vector<16x16xf32>
    tpu.vector_store %arg6[%c0_14, %c0_15], %33 {strides = array<i32>} : memref<16x16xf32, #tpu.memory_space<vmem>>, vector<16x16xf32>,
    %35 = vector.extract_strided_slice %8 {offsets = [0, 8], sizes = [16, 8], strides = [1, 1]} : vector<16x32xf32> to vector<16x8xf32>
    %36 = vector.extract_strided_slice %9 {offsets = [0, 8], sizes = [16, 8], strides = [1, 1]} : vector<16x32xf32> to vector<16x8xf32>
    %37 = vector.extract_strided_slice %10 {offsets = [0, 8], sizes = [16, 8], strides = [1, 1]} : vector<16x32xf32> to vector<16x8xf32>
    %cst_16 = arith.constant dense<0.000000e+00> : vector<16x16xf32>
    %38 = tpu.matmul %35, %36, %cst_16 {dimension_numbers = #tpu.dot_dimension_numbers<[1], [1], [0], [0], [0, 0, 1, 0], [], []>} : vector<16x8xf32>, vector<16x8xf32>, vector<16x16xf32> -> vector<16x16xf32>
    %39 = arith.addf %38, %11 : vector<16x16xf32>
    %cst_17 = arith.constant dense<0xFF800000> : vector<16xf32>
    %40 = vector.multi_reduction <maximumf>, %39, %cst_17 [1] : vector<16x16xf32> to vector<16xf32>
    %41 = vector.shape_cast %40 : vector<16xf32> to vector<16x1xf32>
    %42 = vector.broadcast %41 : vector<16x1xf32> to vector<16x16xf32>
    %43 = arith.subf %39, %42 : vector<16x16xf32>
    %44 = math.exp %43 : vector<16x16xf32>
    %cst_18 = arith.constant dense<0.000000e+00> : vector<16xf32>
    %45 = vector.multi_reduction <add>, %44, %cst_18 [1] : vector<16x16xf32> to vector<16xf32>
    %46 = vector.shape_cast %45 : vector<16xf32> to vector<16x1xf32>
    %47 = tpu.reciprocal %46 {approx = true} : vector<16x1xf32> -> vector<16x1xf32>
    %48 = arith.mulf %46, %47 : vector<16x1xf32>
    %cst_19 = arith.constant 2.000000e+00 : f32
    %49 = vector.broadcast %cst_19 : f32 to vector<16x1xf32>
    %50 = arith.subf %49, %48 : vector<16x1xf32>
    %51 = arith.mulf %47, %50 : vector<16x1xf32>
    %52 = vector.broadcast %51 : vector<16x1xf32> to vector<16x16xf32>
    %53 = arith.mulf %44, %52 : vector<16x16xf32>
    %cst_20 = arith.constant dense<0.000000e+00> : vector<16x8xf32>
    %54 = tpu.matmul %53, %37, %cst_20 {dimension_numbers = #tpu.dot_dimension_numbers<[1], [0], [0], [1], [0, 0, 1, 1], [], []>} : vector<16x16xf32>, vector<16x8xf32>, vector<16x8xf32> -> vector<16x8xf32>
    %c0_21 = arith.constant 0 : index
    %c0_22 = arith.constant 0 : index
    %55 = vector.load %arg6[%c0_21, %c0_22] : memref<16x16xf32, #tpu.memory_space<vmem>>, vector<16x16xf32>
    %cst_23 = arith.constant 2.500000e-01 : f32
    %56 = vector.broadcast %cst_23 : f32 to vector<16x16xf32>
    %57 = arith.mulf %53, %56 : vector<16x16xf32>
    %58 = arith.addf %55, %57 : vector<16x16xf32>
    %c0_24 = arith.constant 0 : index
    %c0_25 = arith.constant 0 : index
    %59 = vector.load %arg6[%c0_24, %c0_25] : memref<16x16xf32, #tpu.memory_space<vmem>>, vector<16x16xf32>
    tpu.vector_store %arg6[%c0_24, %c0_25], %58 {strides = array<i32>} : memref<16x16xf32, #tpu.memory_space<vmem>>, vector<16x16xf32>,
    %60 = vector.extract_strided_slice %8 {offsets = [0, 16], sizes = [16, 8], strides = [1, 1]} : vector<16x32xf32> to vector<16x8xf32>
    %61 = vector.extract_strided_slice %9 {offsets = [0, 16], sizes = [16, 8], strides = [1, 1]} : vector<16x32xf32> to vector<16x8xf32>
    %62 = vector.extract_strided_slice %10 {offsets = [0, 16], sizes = [16, 8], strides = [1, 1]} : vector<16x32xf32> to vector<16x8xf32>
    %cst_26 = arith.constant dense<0.000000e+00> : vector<16x16xf32>
    %63 = tpu.matmul %60, %61, %cst_26 {dimension_numbers = #tpu.dot_dimension_numbers<[1], [1], [0], [0], [0, 0, 1, 0], [], []>} : vector<16x8xf32>, vector<16x8xf32>, vector<16x16xf32> -> vector<16x16xf32>
    %64 = arith.addf %63, %11 : vector<16x16xf32>
    %cst_27 = arith.constant dense<0xFF800000> : vector<16xf32>
    %65 = vector.multi_reduction <maximumf>, %64, %cst_27 [1] : vector<16x16xf32> to vector<16xf32>
    %66 = vector.shape_cast %65 : vector<16xf32> to vector<16x1xf32>
    %67 = vector.broadcast %66 : vector<16x1xf32> to vector<16x16xf32>
    %68 = arith.subf %64, %67 : vector<16x16xf32>
    %69 = math.exp %68 : vector<16x16xf32>
    %cst_28 = arith.constant dense<0.000000e+00> : vector<16xf32>
    %70 = vector.multi_reduction <add>, %69, %cst_28 [1] : vector<16x16xf32> to vector<16xf32>
    %71 = vector.shape_cast %70 : vector<16xf32> to vector<16x1xf32>
    %72 = tpu.reciprocal %71 {approx = true} : vector<16x1xf32> -> vector<16x1xf32>
    %73 = arith.mulf %71, %72 : vector<16x1xf32>
    %cst_29 = arith.constant 2.000000e+00 : f32
    %74 = vector.broadcast %cst_29 : f32 to vector<16x1xf32>
    %75 = arith.subf %74, %73 : vector<16x1xf32>
    %76 = arith.mulf %72, %75 : vector<16x1xf32>
    %77 = vector.broadcast %76 : vector<16x1xf32> to vector<16x16xf32>
    %78 = arith.mulf %69, %77 : vector<16x16xf32>
    %cst_30 = arith.constant dense<0.000000e+00> : vector<16x8xf32>
    %79 = tpu.matmul %78, %62, %cst_30 {dimension_numbers = #tpu.dot_dimension_numbers<[1], [0], [0], [1], [0, 0, 1, 1], [], []>} : vector<16x16xf32>, vector<16x8xf32>, vector<16x8xf32> -> vector<16x8xf32>
    %c0_31 = arith.constant 0 : index
    %c0_32 = arith.constant 0 : index
    %80 = vector.load %arg6[%c0_31, %c0_32] : memref<16x16xf32, #tpu.memory_space<vmem>>, vector<16x16xf32>
    %cst_33 = arith.constant 2.500000e-01 : f32
    %81 = vector.broadcast %cst_33 : f32 to vector<16x16xf32>
    %82 = arith.mulf %78, %81 : vector<16x16xf32>
    %83 = arith.addf %80, %82 : vector<16x16xf32>
    %c0_34 = arith.constant 0 : index
    %c0_35 = arith.constant 0 : index
    %84 = vector.load %arg6[%c0_34, %c0_35] : memref<16x16xf32, #tpu.memory_space<vmem>>, vector<16x16xf32>
    tpu.vector_store %arg6[%c0_34, %c0_35], %83 {strides = array<i32>} : memref<16x16xf32, #tpu.memory_space<vmem>>, vector<16x16xf32>,
    %85 = vector.extract_strided_slice %8 {offsets = [0, 24], sizes = [16, 8], strides = [1, 1]} : vector<16x32xf32> to vector<16x8xf32>
    %86 = vector.extract_strided_slice %9 {offsets = [0, 24], sizes = [16, 8], strides = [1, 1]} : vector<16x32xf32> to vector<16x8xf32>
    %87 = vector.extract_strided_slice %10 {offsets = [0, 24], sizes = [16, 8], strides = [1, 1]} : vector<16x32xf32> to vector<16x8xf32>
    %cst_36 = arith.constant dense<0.000000e+00> : vector<16x16xf32>
    %88 = tpu.matmul %85, %86, %cst_36 {dimension_numbers = #tpu.dot_dimension_numbers<[1], [1], [0], [0], [0, 0, 1, 0], [], []>} : vector<16x8xf32>, vector<16x8xf32>, vector<16x16xf32> -> vector<16x16xf32>
    %89 = arith.addf %88, %11 : vector<16x16xf32>
    %cst_37 = arith.constant dense<0xFF800000> : vector<16xf32>
    %90 = vector.multi_reduction <maximumf>, %89, %cst_37 [1] : vector<16x16xf32> to vector<16xf32>
    %91 = vector.shape_cast %90 : vector<16xf32> to vector<16x1xf32>
    %92 = vector.broadcast %91 : vector<16x1xf32> to vector<16x16xf32>
    %93 = arith.subf %89, %92 : vector<16x16xf32>
    %94 = math.exp %93 : vector<16x16xf32>
    %cst_38 = arith.constant dense<0.000000e+00> : vector<16xf32>
    %95 = vector.multi_reduction <add>, %94, %cst_38 [1] : vector<16x16xf32> to vector<16xf32>
    %96 = vector.shape_cast %95 : vector<16xf32> to vector<16x1xf32>
    %97 = tpu.reciprocal %96 {approx = true} : vector<16x1xf32> -> vector<16x1xf32>
    %98 = arith.mulf %96, %97 : vector<16x1xf32>
    %cst_39 = arith.constant 2.000000e+00 : f32
    %99 = vector.broadcast %cst_39 : f32 to vector<16x1xf32>
    %100 = arith.subf %99, %98 : vector<16x1xf32>
    %101 = arith.mulf %97, %100 : vector<16x1xf32>
    %102 = vector.broadcast %101 : vector<16x1xf32> to vector<16x16xf32>
    %103 = arith.mulf %94, %102 : vector<16x16xf32>
    %cst_40 = arith.constant dense<0.000000e+00> : vector<16x8xf32>
    %104 = tpu.matmul %103, %87, %cst_40 {dimension_numbers = #tpu.dot_dimension_numbers<[1], [0], [0], [1], [0, 0, 1, 1], [], []>} : vector<16x16xf32>, vector<16x8xf32>, vector<16x8xf32> -> vector<16x8xf32>
    %c0_41 = arith.constant 0 : index
    %c0_42 = arith.constant 0 : index
    %105 = vector.load %arg6[%c0_41, %c0_42] : memref<16x16xf32, #tpu.memory_space<vmem>>, vector<16x16xf32>
    %cst_43 = arith.constant 2.500000e-01 : f32
    %106 = vector.broadcast %cst_43 : f32 to vector<16x16xf32>
    %107 = arith.mulf %103, %106 : vector<16x16xf32>
    %108 = arith.addf %105, %107 : vector<16x16xf32>
    %c0_44 = arith.constant 0 : index
    %c0_45 = arith.constant 0 : index
    %109 = vector.load %arg6[%c0_44, %c0_45] : memref<16x16xf32, #tpu.memory_space<vmem>>, vector<16x16xf32>
    tpu.vector_store %arg6[%c0_44, %c0_45], %108 {strides = array<i32>} : memref<16x16xf32, #tpu.memory_space<vmem>>, vector<16x16xf32>,
    %110 = tpu.concatenate %31, %54, %79, %104 in 1 : vector<16x8xf32>, vector<16x8xf32>, vector<16x8xf32>, vector<16x8xf32> -> vector<16x32xf32>
    %c0_46 = arith.constant 0 : index
    %c0_47 = arith.constant 0 : index
    %111 = vector.load %arg5[%c0_46, %c0_47] : memref<16x32xf32, #tpu.memory_space<vmem>>, vector<16x32xf32>
    tpu.vector_store %arg5[%c0_46, %c0_47], %110 {strides = array<i32>} : memref<16x32xf32, #tpu.memory_space<vmem>>, vector<16x32xf32>,
    return
  }
  func.func @transform_0(%arg0: i32) -> (i32, i32) {
    %c0_i32 = arith.constant 0 : i32
    %c0_i32_0 = arith.constant 0 : i32
    %c0_i32_1 = arith.constant 0 : i32
    return %c0_i32, %c0_i32_0 : i32, i32
  }
  func.func @transform_1(%arg0: i32) -> (i32, i32) {
    %c0_i32 = arith.constant 0 : i32
    %c0_i32_0 = arith.constant 0 : i32
    %c0_i32_1 = arith.constant 0 : i32
    return %c0_i32, %c0_i32_0 : i32, i32
  }
  func.func @transform_2(%arg0: i32) -> (i32, i32) {
    %c0_i32 = arith.constant 0 : i32
    %c0_i32_0 = arith.constant 0 : i32
    %c0_i32_1 = arith.constant 0 : i32
    return %c0_i32, %c0_i32_0 : i32, i32
  }
  func.func @transform_3(%arg0: i32) -> (i32, i32) {
    %c0_i32 = arith.constant 0 : i32
    %c0_i32_0 = arith.constant 0 : i32
    %c0_i32_1 = arith.constant 0 : i32
    return %c0_i32, %c0_i32_0 : i32, i32
  }
  func.func @transform_4(%arg0: i32) -> (i32, i32) {
    %c0_i32 = arith.constant 0 : i32
    %c0_i32_0 = arith.constant 0 : i32
    %c0_i32_1 = arith.constant 0 : i32
    return %c0_i32, %c0_i32_0 : i32, i32
  }
  func.func @transform_5(%arg0: i32) -> (i32, i32) {
    %c0_i32 = arith.constant 0 : i32
    %c0_i32_0 = arith.constant 0 : i32
    %c0_i32_1 = arith.constant 0 : i32
    return %c0_i32, %c0_i32_0 : i32, i32
  }
}

</mosaic_0001>

<bundles_post_ra>
// kernel: tpu_custom_call.1
= control target key start
LH: loop header
LB: loop body
LE: loop exit
PB: predicated region body
PF: predicated region fallthrough
CT: control target
= control target key end

     0   :  { %11 = vsyncpa [#allocation3], 0  ;;  %s1583_s0 = inlined_call_operand.hbm [shape: f32[16,32], index: 0, kind: input, shape index: {}]   ;;  %s1584_s1 = inlined_call_operand.hbm [shape: f32[32,96], index: 1, kind: input, shape index: {}]   ;;  %s1585_s2 = inlined_call_operand.vmem [shape: f32[1,96], index: 2, kind: input, shape index: {}]   ;;  %s1586_s3 = inlined_call_operand.hbm [shape: f32[16,16], index: 3, kind: input, shape index: {}]   ;;  %s1587_s4 = inlined_call_operand.hbm [shape: f32[16,32], index: 4, kind: output, shape index: {0}]   ;;  %s1588_s5 = inlined_call_operand.hbm [shape: f32[16,16], index: 5, kind: output, shape index: {1}]  }
   0x1   :  { %12 = vsyncpa [#allocation6], 0 }
   0x2   :  { %13 = vsyncpa [#allocation4], 0 }
   0x3   :  { %14 = vsyncpa [#allocation10], 0  ;;  %s1374_s18 = smov [#allocation5]   ;;  %s1375_s20 = smov [#allocation2]  }
   0x4   :  { %s32_s19 = sshll.u32 %s1374_s18, 4  ;;  %s20_s21 = sshll.u32 %s1375_s20, 4  ;;  %s33_s19 = int_to_ptr.vmem [resolvable:$true] %s32_s19  ;;  %s21_s21 = int_to_ptr.vmem [resolvable:$true] %s20_s21 }
   0x5   :  { %s1274_s22 = scalar_lea.vmem %s33_s19, 512  ;;  %p1279_p1 = scmp.lt.s32.totalorder %s33_s19, %s33_s19 }
   0x6   :  { %p1275_p0 = scmp.ne.s32.totalorder %s33_s19, %s1274_s22  ;;  %p1280_p2 = scmp.lt.s32.totalorder %s1274_s22, %s1274_s22 }
   0x8   :  { %p1281_p3 = por %p1280_p2, %p1279_p1 }
   0xa   :  { %p1282_p4 = pnand %p1281_p3, %p1275_p0 }
   0xc   :  { %1285 = shalt.err (!%p1282_p4)
}
   0xd   :  { %s1376_s23 = smov 128   ;;  %s1377_s24 = smov 8  }
   0xe   :  { %38 = dma.hbm_to_vmem [thread:$0]  %s1584_s1, 512, %s33_s19, [#allocation6], %s1376_s23, %s1376_s23, %s1377_s24  }
   0xf   :  { %s1294_s27 = scalar_lea.vmem %s21_s21, 256  ;;  %p1299_p6 = scmp.lt.s32.totalorder %s21_s21, %s21_s21 }
  0x10   :  { %p1295_p5 = scmp.ne.s32.totalorder %s21_s21, %s1294_s27  ;;  %p1300_p7 = scmp.lt.s32.totalorder %s1294_s27, %s1294_s27 }
  0x12   :  { %p1301_p8 = por %p1300_p7, %p1299_p6 }
  0x14   :  { %p1302_p9 = pnand %p1301_p8, %p1295_p5 }
  0x16   :  { %1305 = shalt.err (!%p1302_p9)
}
  0x17   :  { %26 = dma.hbm_to_vmem [thread:$0]  %s1583_s0, 256, %s21_s21, [#allocation3], %s1376_s23, %s1376_s23, %s1377_s24  }
  0x18   :  { %s1378_s30 = smov [#allocation7]  }
  0x19   :  { %s46_s6 = sshll.u32 %s1378_s30, 4  ;;  %s47_s6 = int_to_ptr.vmem [resolvable:$true] %s46_s6 }
  0x1a   :  { %s1314_s7 = scalar_lea.vmem %s47_s6, 256  ;;  %p1319_p11 = scmp.lt.s32.totalorder %s47_s6, %s47_s6 }
  0x1b   :  { %p1315_p10 = scmp.ne.s32.totalorder %s47_s6, %s1314_s7  ;;  %p1320_p12 = scmp.lt.s32.totalorder %s1314_s7, %s1314_s7 }
  0x1d   :  { %p1321_p13 = por %p1320_p12, %p1319_p11 }
  0x1f   :  { %p1322_p0 = pnand %p1321_p13, %p1315_p10 }
  0x21   :  { %1325 = shalt.err (!%p1322_p0)
}
  0x22   :  { %52 = dma.hbm_to_vmem [thread:$0]  %s1586_s3, 256, %s47_s6, [#allocation6], %s1376_s23, %s1376_s23, %s1377_s24  }
  0x23   :  { %1366 = dma.done.wait [#allocation3], 256  }
  0x24   :  { %1367 = vsyncadd [#allocation3], 4294967040 }
  0x25   :  { %1368 = dma.done.wait [#allocation6], 768  }
  0x26   :  { %1369 = vsyncadd [#allocation6], 4294966528  ;;  %vm75_vm0 = vcmask 261120   ;;  %v67_v0 = vld [vmem:[#allocation5 + $0x18] sm:$0xff]  ;;  %v66_v1 = vld [vmem:[#allocation5 + $0x10] sm:$0xff]  ;;  %s1379_s9 = smov 88  }
  0x27   :  { %1147 = vmatprep.subr.mxu0 %v67_v0  ;;  %v62_v2 = vld [vmem:[#allocation2] sm:$0xff]  ;;  %v65_v3 = vld [vmem:[#allocation5 + $0x8] sm:$0xff]  ;;  %v64_v4 = vld [vmem:[#allocation5] sm:$0xff]  ;;  %s1380_s10 = smov 96   ;;  %vm167_vm1 = vcmask 64512   ;;  %vm253_vm2 = vcmask 130048  }
  0x28   :  { %1148 = vmatpush3.msra.mxu0 %v67_v0  ;;  %1155 = vmatprep.mubr.msk.f32.mxu0 %vm75_vm0, %v62_v2  ;;  %v63_v5 = vld [vmem:[#allocation2 + $0x8] sm:$0xff]  ;;  %v1082_v6 = vld [vmem:[%s1585_s2] ss:$0 sm:$0xff]  ;;  %s1381_s2 = smov 120   ;;  %v1477_v19 = vld [vmem:[#allocation7 + $0x8] sm:$0xff]  ;;  %s1382_s11 = smov 64  }
  0x29   :  { %1149 = vmatprep.subr.mxu0 %v66_v1  ;;  %v1479_v21 = vld [vmem:[#allocation7] sm:$0xff]  ;;  %s1383_s12 = smov 56   ;;  %s1384_s13 = smov 80  }
  0x2a   :  { %1150 = vmatpush3.msra.mxu0 %v66_v1  ;;  %s1385_s14 = smov 112   ;;  %s1386_s15 = smov 48  }
  0x2b   :  { %1151 = vmatprep.subr.mxu0 %v65_v3  ;;  %s1387_s16 = smov 72   ;;  %s1388_s17 = smov 104  }
  0x2c   :  { %1152 = vmatpush3.msra.mxu0 %v65_v3  ;;  %s1389_s18 = smov 40   ;;  %s1390_s19 = smov 16  }
  0x2d   :  { %1153 = vmatprep.subr.mxu0 %v64_v4  ;;  %s1391_s20 = smov [#allocation9]  }
  0x2e   :  { %1154 = vmatpush3.msra.mxu0 %v64_v4  ;;  %s1065_s21 = sshll.u32 %s1391_s20, 4  ;;  %s1066_s21 = int_to_ptr.vmem [resolvable:$true] %s1065_s21 }
  0x2f   :  { %1156 = vmatmul.mubr.msk.f32.vlgmr.msra.gmra.mxu0 %vm75_vm0, %v63_v5  ;;  %s1326_s22 = scalar_lea.vmem %s1066_s21, 256  ;;  %p1331_p2 = scmp.lt.s32.totalorder %s1066_s21, %s1066_s21 }
  0x30   :  { %p1327_p1 = scmp.ne.s32.totalorder %s1066_s21, %s1326_s22  ;;  %p1332_p3 = scmp.lt.s32.totalorder %s1326_s22, %s1326_s22 }
  0x32   :  { %p1333_p4 = por %p1332_p3, %p1331_p2 }
  0x34   :  { %p1334_p5 = pnand %p1333_p4, %p1327_p1 }
  0xef   :  { %v1157_v7 = vpop.f32.mrf.mxu0 }
  0xf0   :  { %v1447_v8 = vadd.f32 %v1157_v7, %v1082_v6 }
  0xf1   :  { %v148_v9 = vpop.f32.mrf.mxu0 }
  0xf2   :  { %v1449_v10 = vadd.f32 %v1082_v6, %v148_v9  ;;  %379 = vrot.lane.b32.xlu1 %v1447_v8, %s1379_s9  ;;  %165 = vrot.lane.b32.xlu0 %v1447_v8, %s1380_s10  ;;  %v1461_v12 = vmul.f32 0.25, %v1447_v8 }
  0xf4   :  { %v1454_v11 = vmul.f32 0.25, %v1449_v10 }
  0xf6   :  { %377 = vrot.lane.b32.xlu1 %v1449_v10, %s1379_s9  ;;  %163 = vrot.lane.b32.xlu0 %v1449_v10, %s1380_s10 }
  0xf7   :  { %1162 = vmatprep.mubr.msk.f32.mxu1 %vm167_vm1, %v1454_v11 }
  0xfa   :  { %375 = vrot.lane.b32.xlu1 %v1461_v12, %s1381_s2  ;;  %373 = vrot.lane.b32.xlu0 %v1454_v11, %s1381_s2 }
 0x164   :  { %v166_v13 = vpop.permute.xlu0 %165  ;;  %v380_v14 = vpop.permute.xlu1 %379 }
 0x165   :  { %1158 = vmatprep.subr.msk.mxu1 %vm167_vm1, %v166_v13 }
 0x166   :  { %1159 = vmatpush3.xpose.msk.msra.mxu1 %vm167_vm1, %v166_v13 }
 0x168   :  { %v164_v15 = vpop.permute.xlu0 %163  ;;  %v378_v17 = vpop.permute.xlu1 %377 }
 0x169   :  { %1160 = vmatprep.subr.msk.mxu1 %vm167_vm1, %v164_v15 }
 0x16a   :  { %1161 = vmatpush3.xpose.msk.msra.mxu1 %vm167_vm1, %v164_v15 }
 0x16b   :  { %1172 = vmatprep.subr.msk.mxu1 %vm167_vm1, %v380_v14 }
 0x16c   :  { %v374_v16 = vpop.permute.xlu0 %373  ;;  %v376_v18 = vpop.permute.xlu1 %375 }
 0x16d   :  { %1163 = vmatmul.mubr.msk.f32.vlgmr.msra.gmra.mxu1 %vm167_vm1, %v1461_v12 }
 0x16e   :  { %1173 = vmatpush3.xpose.msk.msra.mxu1 %vm167_vm1, %v380_v14  ;;  %1176 = vmatprep.mubr.msk.f32.mxu1 %vm167_vm1, %v374_v16 }
 0x16f   :  { %1174 = vmatprep.subr.msk.mxu1 %vm167_vm1, %v378_v17 }
 0x172   :  { %1175 = vmatpush3.xpose.msk.msra.mxu1 %vm167_vm1, %v378_v17 }
 0x175   :  { %1177 = vmatmul.mubr.msk.f32.vlgmr.msra.gmra.mxu1 %vm167_vm1, %v376_v18 }
 0x22d   :  { %v1164_v20 = vpop.f32.mrf.mxu1 }
 0x22e   :  { %v250_v22 = vadd.f32 %v1164_v20, %v1477_v19 }
 0x22f   :  { %v244_v23 = vpop.f32.mrf.mxu1 }
 0x230   :  { %v245_v24 = vadd.f32 %v244_v23, %v1479_v21  ;;  %v257_v25 = vsel %vm253_vm2, %v250_v22, -inf }
 0x231   :  { %258 = vmax.xlane.f32.xlu1 %v257_v25 }
 0x232   :  { %v254_v26 = vsel %vm253_vm2, %v245_v24, -inf }
 0x233   :  { %255 = vmax.xlane.f32.xlu0 %v254_v26 }
 0x235   :  { %v1178_v27 = vpop.f32.mrf.mxu1 }
 0x236   :  { %v461_v30 = vadd.f32 %v1178_v27, %v1477_v19 }
 0x237   :  { %v455_v28 = vpop.f32.mrf.mxu1 }
 0x238   :  { %v456_v29 = vadd.f32 %v455_v28, %v1479_v21  ;;  %v467_v32 = vsel %vm253_vm2, %v461_v30, -inf }
 0x23a   :  { %v464_v31 = vsel %vm253_vm2, %v456_v29, -inf }
 0x23b   :  { %465 = vmax.xlane.f32.xlu0 %v464_v31 }
 0x23f   :  { %468 = vmax.xlane.f32.xlu0 %v467_v32 }
 0x242   :  { %284 = vrot.lane.b32.xlu1 %v1447_v8, %s1382_s11 }
 0x2ba   :  { %v259_v33 = vpop.xlane.xlu1 %258 }
 0x2bb   :  { %v261_v34 = vsub.f32 %v250_v22, %v259_v33 }
 0x2bc   :  { %v256_v35 = vpop.xlane.xlu0 %255 }
 0x2bd   :  { %v264_v36 = vmul.f32 1.442695, %v261_v34  ;;  %v260_v37 = vsub.f32 %v245_v24, %v256_v35 }
 0x2be   :  { %v285_v38 = vpop.permute.xlu1 %284 }
 0x2bf   :  { %1234 = vpow2.f32 %v264_v36  ;;  %v262_v39 = vmul.f32 1.442695, %v260_v37  ;;  %1165 = vmatprep.subr.mxu0 %v285_v38 }
 0x2c0   :  { %1166 = vmatpush3.msra.mxu0 %v285_v38 }
 0x2c1   :  { %1236 = vpow2.f32 %v262_v39 }
 0x2c4   :  { %v466_v40 = vpop.xlane.xlu0 %465 }
 0x2c5   :  { %v470_v50 = vsub.f32 %v456_v29, %v466_v40 }
 0x2c7   :  { %v472_v51 = vmul.f32 1.442695, %v470_v50 }
 0x2c8   :  { %v469_v41 = vpop.xlane.xlu0 %468 }
 0x2c9   :  { %v471_v42 = vsub.f32 %v461_v30, %v469_v41 }
 0x2cb   :  { %v474_v43 = vmul.f32 1.442695, %v471_v42 }
 0x2cc   :  { %v1235_v44 = vpop.eup %1234 }
 0x2cd   :  { %1238 = vpow2.f32 %v474_v43  ;;  %v269_v45 = vsel %vm253_vm2, %v1235_v44, 0.0 }
 0x2ce   :  { %v1237_v46 = vpop.eup %1236  ;;  %270 = vadd.xlane.f32.xlu0 %v269_v45  ;;  %1240 = vpow2.f32 %v472_v51 }
 0x2cf   :  { %v266_v47 = vsel %vm253_vm2, %v1237_v46, 0.0 }
 0x2d0   :  { %267 = vadd.xlane.f32.xlu1 %v266_v47 }
 0x2da   :  { %v1239_v48 = vpop.eup %1238 }
 0x2db   :  { %v479_v49 = vsel %vm253_vm2, %v1239_v48, 0.0  ;;  %v1241_v52 = vpop.eup %1240 }
 0x2dc   :  { %480 = vadd.xlane.f32.xlu0 %v479_v49  ;;  %v476_v53 = vsel %vm253_vm2, %v1241_v52, 0.0 }
 0x2e1   :  { %494 = vrot.lane.b32.xlu1 %v1447_v8, %s1383_s12 }
 0x2f2   :  { %282 = vrot.lane.b32.xlu0 %v1449_v10, %s1382_s11 }
 0x2f6   :  { %593 = vrot.lane.b32.xlu0 %v1447_v8, %s1384_s13 }
 0x2fa   :  { %587 = vrot.lane.b32.xlu0 %v1454_v11, %s1385_s14 }
 0x305   :  { %477 = vadd.xlane.f32.xlu1 %v476_v53 }
 0x316   :  { %492 = vrot.lane.b32.xlu1 %v1449_v10, %s1383_s12 }
 0x31a   :  { %591 = vrot.lane.b32.xlu1 %v1449_v10, %s1384_s13 }
 0x31e   :  { %589 = vrot.lane.b32.xlu1 %v1461_v12, %s1385_s14 }
 0x357   :  { %v271_v54 = vpop.xlane.xlu0 %270 }
 0x358   :  { %1242 = vrcp.f32 %v271_v54 }
 0x359   :  { %v268_v55 = vpop.xlane.xlu1 %267 }
 0x35a   :  { %1244 = vrcp.f32 %v268_v55 }
 0x35d   :  { %v495_v1 = vpop.permute.xlu1 %494 }
 0x365   :  { %v1243_v56 = vpop.eup %1242  ;;  %v481_v57 = vpop.xlane.xlu0 %480 }
 0x366   :  { %v275_v58 = vmul.f32 %v1243_v56, %v271_v54  ;;  %1246 = vrcp.f32 %v481_v57 }
 0x367   :  { %v1245_v59 = vpop.eup %1244 }
 0x368   :  { %v277_v60 = vsub.f32 2.0, %v275_v58  ;;  %v274_v61 = vmul.f32 %v1245_v59, %v268_v55 }
 0x369   :  { %v283_v62 = vpop.permute.xlu0 %282 }
 0x36a   :  { %v279_v63 = vmul.f32 %v1243_v56, %v277_v60  ;;  %v276_v0 = vsub.f32 2.0, %v274_v61  ;;  %1167 = vmatprep.subr.mxu0 %v283_v62 }
 0x36b   :  { %1168 = vmatpush3.msra.mxu0 %v283_v62 }
 0x36c   :  { %v281_v2 = vmul.f32 %v1235_v44, %v279_v63  ;;  %v278_v3 = vmul.f32 %v1245_v59, %v276_v0  ;;  %1179 = vmatprep.subr.mxu0 %v495_v1 }
 0x36d   :  { %v594_v23 = vpop.permute.xlu0 %593 }
 0x36e   :  { %v370_v4 = vmul.f32 0.25, %v281_v2  ;;  %v280_v5 = vmul.f32 %v1237_v46, %v278_v3 }
 0x370   :  { %372 = vst.msk [vmem:[#allocation9 + $0x8] sm:$0xff] %vm253_vm2, %v370_v4  ;;  %v369_v6 = vmul.f32 0.25, %v280_v5  ;;  %1169 = vmatprep.mubr.msk.f32.mxu0 %vm253_vm2, %v280_v5 }
 0x371   :  { %1170 = vmatmul.mubr.msk.f32.vlgmr.msra.gmra.mxu0 %vm253_vm2, %v281_v2  ;;  %v588_v30 = vpop.permute.xlu0 %587 }
 0x372   :  { %371 = vst.msk [vmem:[#allocation9] sm:$0xff] %vm253_vm2, %v369_v6  ;;  %1180 = vmatpush3.msra.mxu0 %v495_v1 }
 0x373   :  { %v1247_v7 = vpop.eup %1246 }
 0x374   :  { %v485_v9 = vmul.f32 %v1247_v7, %v481_v57 }
 0x376   :  { %v487_v13 = vsub.f32 2.0, %v485_v9 }
 0x377   :  { %v580_v17 = vld [vmem:[#allocation9 + $0x8] sm:$0xff] }
 0x378   :  { %v489_v14 = vmul.f32 %v1247_v7, %v487_v13 }
 0x379   :  { %v579_v31 = vld [vmem:[#allocation9] sm:$0xff] }
 0x37a   :  { %v491_v15 = vmul.f32 %v1239_v48, %v489_v14 }
 0x37c   :  { %v582_v16 = vmul.f32 0.25, %v491_v15 }
 0x37e   :  { %v584_v18 = vadd.f32 %v582_v16, %v580_v17 }
 0x380   :  { %586 = vst.msk [vmem:[#allocation9 + $0x8] sm:$0xff] %vm253_vm2, %v584_v18 }
 0x387   :  { %v794_v14 = vld [vmem:[#allocation9 + $0x8] sm:$0xff] }
 0x38e   :  { %v478_v20 = vpop.xlane.xlu1 %477 }
 0x38f   :  { %1248 = vrcp.f32 %v478_v20 }
 0x392   :  { %v493_v22 = vpop.permute.xlu1 %492 }
 0x393   :  { %1181 = vmatprep.subr.mxu0 %v493_v22 }
 0x394   :  { %1182 = vmatpush3.msra.mxu0 %v493_v22 }
 0x395   :  { %1186 = vmatprep.subr.msk.mxu0 %vm167_vm1, %v594_v23 }
 0x396   :  { %v592_v33 = vpop.permute.xlu1 %591 }
 0x39a   :  { %v590_v34 = vpop.permute.xlu1 %589 }
 0x39c   :  { %v1249_v24 = vpop.eup %1248 }
 0x39d   :  { %v484_v25 = vmul.f32 %v1249_v24, %v478_v20 }
 0x39f   :  { %v486_v26 = vsub.f32 2.0, %v484_v25 }
 0x3a1   :  { %v488_v27 = vmul.f32 %v1249_v24, %v486_v26 }
 0x3a3   :  { %v490_v28 = vmul.f32 %v1241_v52, %v488_v27 }
 0x3a5   :  { %v581_v29 = vmul.f32 0.25, %v490_v28  ;;  %1183 = vmatprep.mubr.msk.f32.mxu0 %vm253_vm2, %v490_v28 }
 0x3a6   :  { %1184 = vmatmul.mubr.msk.f32.vlgmr.msra.gmra.mxu0 %vm253_vm2, %v491_v15 }
 0x3a7   :  { %v583_v32 = vadd.f32 %v581_v29, %v579_v31  ;;  %1187 = vmatpush3.xpose.msk.msra.mxu0 %vm167_vm1, %v594_v23  ;;  %1190 = vmatprep.mubr.msk.f32.mxu0 %vm167_vm1, %v588_v30 }
 0x3a8   :  { %1188 = vmatprep.subr.msk.mxu0 %vm167_vm1, %v592_v33 }
 0x3a9   :  { %585 = vst.msk [vmem:[#allocation9] sm:$0xff] %vm253_vm2, %v583_v32 }
 0x3ab   :  { %1189 = vmatpush3.xpose.msk.msra.mxu0 %vm167_vm1, %v592_v33 }
 0x3ae   :  { %1191 = vmatmul.mubr.msk.f32.vlgmr.msra.gmra.mxu0 %vm167_vm1, %v590_v34 }
 0x3b0   :  { %v793_v4 = vld [vmem:[#allocation9] sm:$0xff] }
 0x431   :  { %v1517_v35 = vpop.f32.mrf.mxu0 }
 0x433   :  { %v1519_v36 = vpop.f32.mrf.mxu0 }
 0x466   :  { %v1521_v37 = vpop.f32.mrf.mxu0 }
 0x468   :  { %v1523_v38 = vpop.f32.mrf.mxu0 }
 0x46e   :  { %v1192_v39 = vpop.f32.mrf.mxu0 }
 0x46f   :  { %v675_v40 = vadd.f32 %v1192_v39, %v1477_v19 }
 0x470   :  { %v669_v41 = vpop.f32.mrf.mxu0 }
 0x471   :  { %v670_v42 = vadd.f32 %v669_v41, %v1479_v21  ;;  %v681_v43 = vsel %vm253_vm2, %v675_v40, -inf }
 0x472   :  { %682 = vmax.xlane.f32.xlu1 %v681_v43 }
 0x473   :  { %v678_v44 = vsel %vm253_vm2, %v670_v42, -inf }
 0x474   :  { %679 = vmax.xlane.f32.xlu0 %v678_v44 }
 0x483   :  { %708 = vrot.lane.b32.xlu1 %v1447_v8, %s1386_s15 }
 0x487   :  { %807 = vrot.lane.b32.xlu1 %v1447_v8, %s1387_s16 }
 0x48b   :  { %805 = vrot.lane.b32.xlu1 %v1449_v10, %s1387_s16 }
 0x48f   :  { %803 = vrot.lane.b32.xlu1 %v1461_v12, %s1388_s17 }
 0x4fb   :  { %v683_v45 = vpop.xlane.xlu1 %682 }
 0x4fc   :  { %v685_v46 = vsub.f32 %v675_v40, %v683_v45 }
 0x4fd   :  { %v680_v47 = vpop.xlane.xlu0 %679 }
 0x4fe   :  { %v684_v48 = vsub.f32 %v670_v42, %v680_v47  ;;  %v688_v50 = vmul.f32 1.442695, %v685_v46 }
 0x4ff   :  { %v709_v49 = vpop.permute.xlu1 %708 }
 0x500   :  { %v686_v51 = vmul.f32 1.442695, %v684_v48  ;;  %1193 = vmatprep.subr.mxu1 %v709_v49 }
 0x501   :  { %1194 = vmatpush3.msra.mxu1 %v709_v49 }
 0x502   :  { %1250 = vpow2.f32 %v686_v51 }
 0x503   :  { %1252 = vpow2.f32 %v688_v50  ;;  %v808_v58 = vpop.permute.xlu1 %807 }
 0x507   :  { %v806_v13 = vpop.permute.xlu1 %805 }
 0x50b   :  { %v804_v16 = vpop.permute.xlu1 %803 }
 0x50f   :  { %v1251_v52 = vpop.eup %1250 }
 0x510   :  { %v690_v53 = vsel %vm253_vm2, %v1251_v52, 0.0  ;;  %v1253_v54 = vpop.eup %1252 }
 0x511   :  { %691 = vadd.xlane.f32.xlu0 %v690_v53  ;;  %v693_v55 = vsel %vm253_vm2, %v1253_v54, 0.0 }
 0x515   :  { %694 = vadd.xlane.f32.xlu0 %v693_v55 }
 0x52b   :  { %706 = vrot.lane.b32.xlu0 %v1449_v10, %s1386_s15 }
 0x52f   :  { %801 = vrot.lane.b32.xlu0 %v1454_v11, %s1388_s17 }
 0x59a   :  { %v692_v12 = vpop.xlane.xlu0 %691 }
 0x59b   :  { %1254 = vrcp.f32 %v692_v12 }
 0x59e   :  { %v695_v56 = vpop.xlane.xlu0 %694 }
 0x59f   :  { %1256 = vrcp.f32 %v695_v56 }
 0x5a2   :  { %v707_v57 = vpop.permute.xlu0 %706 }
 0x5a3   :  { %1195 = vmatprep.subr.mxu1 %v707_v57 }
 0x5a4   :  { %1196 = vmatpush3.msra.mxu1 %v707_v57 }
 0x5a5   :  { %1200 = vmatprep.subr.msk.mxu1 %vm167_vm1, %v808_v58 }
 0x5a6   :  { %v802_v9 = vpop.permute.xlu0 %801 }
 0x5a8   :  { %v1255_v59 = vpop.eup %1254 }
 0x5a9   :  { %v698_v60 = vmul.f32 %v1255_v59, %v692_v12 }
 0x5ab   :  { %v700_v61 = vsub.f32 2.0, %v698_v60 }
 0x5ac   :  { %v1257_v62 = vpop.eup %1256 }
 0x5ad   :  { %v702_v63 = vmul.f32 %v1255_v59, %v700_v61  ;;  %v699_v0 = vmul.f32 %v1257_v62, %v695_v56 }
 0x5af   :  { %v704_v1 = vmul.f32 %v1251_v52, %v702_v63  ;;  %v701_v2 = vsub.f32 2.0, %v699_v0 }
 0x5b1   :  { %v795_v3 = vmul.f32 0.25, %v704_v1  ;;  %v703_v11 = vmul.f32 %v1257_v62, %v701_v2  ;;  %1197 = vmatprep.mubr.msk.f32.mxu1 %vm253_vm2, %v704_v1 }
 0x5b3   :  { %v797_v5 = vadd.f32 %v795_v3, %v793_v4  ;;  %v705_v6 = vmul.f32 %v1253_v54, %v703_v11 }
 0x5b5   :  { %799 = vst.msk [vmem:[#allocation9] sm:$0xff] %vm253_vm2, %v797_v5  ;;  %v796_v7 = vmul.f32 0.25, %v705_v6  ;;  %1198 = vmatmul.mubr.msk.f32.vlgmr.msra.gmra.mxu1 %vm253_vm2, %v705_v6 }
 0x5b6   :  { %1201 = vmatpush3.xpose.msk.msra.mxu1 %vm167_vm1, %v808_v58  ;;  %1204 = vmatprep.mubr.msk.f32.mxu1 %vm167_vm1, %v802_v9 }
 0x5b7   :  { %v798_v15 = vadd.f32 %v796_v7, %v794_v14  ;;  %1202 = vmatprep.subr.msk.mxu1 %vm167_vm1, %v806_v13 }
 0x5b9   :  { %800 = vst.msk [vmem:[#allocation9 + $0x8] sm:$0xff] %vm253_vm2, %v798_v15 }
 0x5ba   :  { %1203 = vmatpush3.xpose.msk.msra.mxu1 %vm167_vm1, %v806_v13 }
 0x5bd   :  { %1205 = vmatmul.mubr.msk.f32.vlgmr.msra.gmra.mxu1 %vm167_vm1, %v804_v16 }
 0x5c0   :  { %v1008_v53 = vld [vmem:[#allocation9 + $0x8] sm:$0xff] }
 0x675   :  { %v1199_v17 = vpop.f32.mrf.mxu1 }
 0x677   :  { %v784_v18 = vpop.f32.mrf.mxu1 }
 0x67d   :  { %v1206_v20 = vpop.f32.mrf.mxu1 }
 0x67e   :  { %v889_v22 = vadd.f32 %v1206_v20, %v1477_v19 }
 0x67f   :  { %v883_v23 = vpop.f32.mrf.mxu1 }
 0x680   :  { %v884_v24 = vadd.f32 %v883_v23, %v1479_v21  ;;  %v895_v25 = vsel %vm253_vm2, %v889_v22, -inf }
 0x681   :  { %896 = vmax.xlane.f32.xlu1 %v895_v25 }
 0x682   :  { %v892_v26 = vsel %vm253_vm2, %v884_v24, -inf }
 0x683   :  { %893 = vmax.xlane.f32.xlu0 %v892_v26 }
 0x692   :  { %922 = vrot.lane.b32.xlu1 %v1447_v8, %s1389_s18 }
 0x696   :  { %1017 = vrot.lane.b32.xlu1 %v1523_v38, %s1377_s24 }
 0x69a   :  { %1019 = vrot.lane.b32.xlu1 %v1521_v37, %s1377_s24 }
 0x69e   :  { %1027 = vrot.lane.b32.xlu1 %v1199_v17, %s1390_s19 }
 0x70a   :  { %v897_v19 = vpop.xlane.xlu1 %896 }
 0x70b   :  { %v899_v27 = vsub.f32 %v889_v22, %v897_v19 }
 0x70c   :  { %v894_v21 = vpop.xlane.xlu0 %893 }
 0x70d   :  { %v898_v28 = vsub.f32 %v884_v24, %v894_v21  ;;  %v902_v30 = vmul.f32 1.442695, %v899_v27 }
 0x70e   :  { %v923_v29 = vpop.permute.xlu1 %922 }
 0x70f   :  { %v900_v31 = vmul.f32 1.442695, %v898_v28  ;;  %1207 = vmatprep.subr.mxu0 %v923_v29 }
 0x710   :  { %1208 = vmatpush3.msra.mxu0 %v923_v29 }
 0x711   :  { %1258 = vpow2.f32 %v900_v31 }
 0x712   :  { %1260 = vpow2.f32 %v902_v30 }
 0x71e   :  { %v1259_v8 = vpop.eup %1258 }
 0x71f   :  { %v904_v32 = vsel %vm253_vm2, %v1259_v8, 0.0  ;;  %v1261_v33 = vpop.eup %1260 }
 0x720   :  { %905 = vadd.xlane.f32.xlu0 %v904_v32  ;;  %v907_v34 = vsel %vm253_vm2, %v1261_v33, 0.0 }
 0x724   :  { %908 = vadd.xlane.f32.xlu0 %v907_v34 }
 0x73a   :  { %920 = vrot.lane.b32.xlu0 %v1449_v10, %s1389_s18  ;;  %v1007_v10 = vld [vmem:[#allocation9] sm:$0xff] }
 0x73e   :  { %1025 = vrot.lane.b32.xlu0 %v784_v18, %s1390_s19 }
 0x7a9   :  { %v906_v37 = vpop.xlane.xlu0 %905 }
 0x7aa   :  { %1262 = vrcp.f32 %v906_v37 }
 0x7ad   :  { %v909_v38 = vpop.xlane.xlu0 %908 }
 0x7ae   :  { %1264 = vrcp.f32 %v909_v38 }
 0x7b1   :  { %v921_v39 = vpop.permute.xlu0 %920 }
 0x7b2   :  { %1209 = vmatprep.subr.mxu0 %v921_v39 }
 0x7b3   :  { %1210 = vmatpush3.msra.mxu0 %v921_v39 }
 0x7b7   :  { %v1263_v40 = vpop.eup %1262 }
 0x7b8   :  { %v912_v41 = vmul.f32 %v1263_v40, %v906_v37 }
 0x7ba   :  { %v914_v42 = vsub.f32 2.0, %v912_v41 }
 0x7bb   :  { %v1265_v43 = vpop.eup %1264 }
 0x7bc   :  { %v916_v44 = vmul.f32 %v1263_v40, %v914_v42  ;;  %v913_v45 = vmul.f32 %v1265_v43, %v909_v38 }
 0x7be   :  { %v918_v46 = vmul.f32 %v1259_v8, %v916_v44  ;;  %v915_v47 = vsub.f32 2.0, %v913_v45 }
 0x7c0   :  { %v1009_v48 = vmul.f32 0.25, %v918_v46  ;;  %v917_v49 = vmul.f32 %v1265_v43, %v915_v47  ;;  %1211 = vmatprep.mubr.msk.f32.mxu0 %vm253_vm2, %v918_v46 }
 0x7c2   :  { %v919_v50 = vmul.f32 %v1261_v33, %v917_v49  ;;  %v1011_v51 = vadd.f32 %v1009_v48, %v1007_v10 }
 0x7c4   :  { %v1010_v52 = vmul.f32 0.25, %v919_v50  ;;  %1212 = vmatmul.mubr.msk.f32.vlgmr.msra.gmra.mxu0 %vm253_vm2, %v919_v50  ;;  %1013 = vst.msk [vmem:[#allocation9] sm:$0xff] %vm253_vm2, %v1011_v51 }
 0x7c6   :  { %v1012_v54 = vadd.f32 %v1010_v52, %v1008_v53 }
 0x7c8   :  { %1014 = vst.msk [vmem:[#allocation9 + $0x8] sm:$0xff] %vm253_vm2, %v1012_v54 }
 0x7c9   :  { %1337 = shalt.err (!%p1334_p5)
}
 0x7ca   :  { %1071 = dma.vmem_to_hbm [thread:$0]  %s1066_s21, 256, %s1588_s5, [#allocation10], %s1376_s23, %s1376_s23, %s1377_s24   ;;  %v1018_v56 = vpop.permute.xlu1 %1017  ;;  %v1026_v59 = vpop.permute.xlu0 %1025  ;;  %vm1043_vm3 = vcmask 195584  }
 0x7cb   :  { %s1392_s27 = smov 24   ;;  %s1393_s28 = smov [#allocation8]   ;;  %v1039_v63 = vsel %vm167_vm1, %v1519_v36, %v1018_v56 }
 0x7cc   :  { %s1053_s29 = sshll.u32 %s1393_s28, 4  ;;  %v1041_v1 = vsel %vm253_vm2, %v1039_v63, %v1026_v59  ;;  %s1054_s29 = int_to_ptr.vmem [resolvable:$true] %s1053_s29 }
 0x7cd   :  { %s1346_s5 = scalar_lea.vmem %s1054_s29, 256  ;;  %p1351_p7 = scmp.lt.s32.totalorder %s1054_s29, %s1054_s29 }
 0x7ce   :  { %v1020_v57 = vpop.permute.xlu1 %1019  ;;  %p1347_p6 = scmp.ne.s32.totalorder %s1054_s29, %s1346_s5  ;;  %p1352_p8 = scmp.lt.s32.totalorder %s1346_s5, %s1346_s5 }
 0x7cf   :  { %v1040_v60 = vsel %vm167_vm1, %v1517_v35, %v1020_v57 }
 0x7d0   :  { %p1353_p9 = por %p1352_p8, %p1351_p7 }
 0x7d2   :  { %v1028_v58 = vpop.permute.xlu1 %1027  ;;  %p1354_p10 = pnand %p1353_p9, %p1347_p6 }
 0x7d3   :  { %v1042_v61 = vsel %vm253_vm2, %v1040_v60, %v1028_v58 }
 0x884   :  { %v1213_v55 = vpop.f32.mrf.mxu0 }
 0x885   :  { %1035 = vrot.lane.b32.xlu1 %v1213_v55, %s1392_s27 }
 0x886   :  { %v998_v12 = vpop.f32.mrf.mxu0 }
 0x887   :  { %1033 = vrot.lane.b32.xlu0 %v998_v12, %s1392_s27 }
 0x8f7   :  { %v1036_v62 = vpop.permute.xlu1 %1035 }
 0x8f8   :  { %v1045_v0 = vsel %vm1043_vm3, %v1042_v61, %v1036_v62 }
 0x8f9   :  { %1047 = vst.msk [vmem:[#allocation8 + $0x8] sm:$0xff] %vm75_vm0, %v1045_v0  ;;  %v1034_v2 = vpop.permute.xlu0 %1033 }
 0x8fa   :  { %v1044_v3 = vsel %vm1043_vm3, %v1041_v1, %v1034_v2 }
 0x8fb   :  { %1046 = vst.msk [vmem:[#allocation8] sm:$0xff] %vm75_vm0, %v1044_v3 }
 0x8fc   :  { %1357 = shalt.err (!%p1354_p10)
}
 0x8fd   :  { %1059 = dma.vmem_to_hbm [thread:$0]  %s1054_s29, 256, %s1587_s4, [#allocation4], %s1376_s23, %s1376_s23, %s1377_s24  }
 0x8fe   :  { %1370 = dma.done.wait [#allocation4], 256  }
 0x8ff   :  { %1371 = vsyncadd [#allocation4], 4294967040 }
 0x900   :  { %1372 = dma.done.wait [#allocation10], 256  }
 0x901   :  { %1373 = vsyncadd [#allocation10], 4294967040 }
 0x902   :  { %1078 = vsyncpa [#allocation3], 1 }
 0x903   :  { %1079 = vsyncpa [#allocation6], 1 }
 0x904   :  { %1080 = vsyncpa [#allocation4], 1 }
 0x905   :  { %1081 = vsyncpa [#allocation10], 1 }

</bundles_post_ra>
